<compile_context>
chip_gen: v6e
topology: v6e:2x2x1
jax: 0.10.0
libtpu: 0.0.40
codegen_flags: <defaults>
</compile_context>

<pallas_src>
import functools
import math

import jax
import jax.numpy as jnp
from jax.experimental import pallas as pl
from jax.experimental.pallas import tpu as pltpu


UP_SCALE = 7     # nn.Upsample(scale_factor=7), nearest
PATCH = 32       # CLIP ViT patch size; pooled image is 224 = 7 * 32
LANE = 128       # TPU lane width


# ------------------------- exact linear operators ---------------------------

def _build_pool_matrix(stylegan_size):
    """A (224, S) such that A @ x @ A.T == AvgPool2d(S//32)(Upsample(x7)(x))."""
    k = stylegan_size // 32
    out_size = (stylegan_size * UP_SCALE) // k                      # 224
    cols = (jnp.arange(out_size)[:, None] * k
            + jnp.arange(k)[None, :]) // UP_SCALE                   # (O, k)
    a = (cols[:, :, None] ==
         jnp.arange(stylegan_size)[None, None, :]).astype(jnp.float32)
    return a.sum(axis=1) / float(k)                                 # (O, S)


def build_params(key, *, stylegan_size, channels, embed_dim):
    """Synthetic-encoder weights and the exact offline fold used by the kernel."""
    pool_a = _build_pool_matrix(stylegan_size)                      # (224, S)
    # Fold the encoder's mean over the 7x7 patch grid into the pooling matrix:
    #   ap[p, i] = (1/7) * sum_g pool_a[32*g + p, i]                 -> (32, S)
    ap = pool_a.reshape(UP_SCALE, PATCH, stylegan_size).mean(axis=0)

    patch_dim = channels * PATCH * PATCH
    w_img = 0.02 * jax.random.normal(key, (patch_dim, embed_dim), jnp.float32)
    w3 = w_img.reshape(channels, PATCH, PATCH, embed_dim)

    # Exact composition upsample -> avgpool -> patch-mean -> projection:
    #   emb[b, d] = sum_{c,i,j} x[b, c, i, j] * w_fold[(c, i, j), d]
    w_fold = jnp.einsum("pi,qj,cpqd->cijd", ap, ap, w3,
                        precision=jax.lax.Precision.HIGHEST)
    w_fold = w_fold.reshape(channels * stylegan_size * stylegan_size, embed_dim)

    # Lane-pad D -> multiple of 128 with zero columns (exact: zero columns add
    # nothing to the row norms or to f1 @ f2.T) and store in bf16 (halves the
    # dominant HBM weight read; MXU-native on v5e/v6e/v7x).
    d_pad = max(LANE, ((embed_dim + LANE - 1) // LANE) * LANE)
    w_fold = jnp.pad(w_fold, ((0, 0), (0, d_pad - embed_dim)))

    return {
        "w_fold_bf16": w_fold.astype(jnp.bfloat16),          # kernel weight
        "w_img": w_img,                                       # pure-JAX reference
        "pool_k": stylegan_size // 32,
        "embed_dim": embed_dim,
        "logit_scale": jnp.float32(math.log(1.0 / 0.07)),     # CLIP init
    }


# ------------------------------ Pallas kernel -------------------------------

def _clip_image_loss_kernel(x_ref, w_ref, scale_ref, out_ref, acc_ref):
    # x_ref:    (2B, tk)  bf16   stacked [image1; image2] K-tile
    # w_ref:    (tk, Dp)  bf16   folded avgpool+upsample+encoder weight K-tile
    # scale_ref:(1,)      f32    SMEM scalar = exp(logit_scale) / 100
    # out_ref:  (B, B)    f32    1 - scale * <f1_i, f2_j>
    # acc_ref:  (2B, Dp)  f32    VMEM accumulator, resident across the K grid
    k = pl.program_id(0)

    @pl.when(k == 0)
    def _init():
        acc_ref[...] = jnp.zeros_like(acc_ref)

    acc_ref[...] += jnp.dot(x_ref[...], w_ref[...],
                            preferred_element_type=jnp.float32)

    @pl.when(k == pl.num_programs(0) - 1)
    def _finalize():
        e = acc_ref[...]                                            # (2B, Dp)
        # f / f.norm(dim=1, keepdim=True)  (no eps, as in the PyTorch module;
        # a zero-norm embedding row would produce inf/NaN exactly like torch).
        e = e * jax.lax.rsqrt(jnp.sum(e * e, axis=-1, keepdims=True))
        b = out_ref.shape[0]
        e1 = e[:b, :]
        e2 = e[b:, :]
        logits = jax.lax.dot_general(
            e1, e2, (((1,), (1,)), ((), ())),
            preferred_element_type=jnp.float32)                     # (B, B)
        out_ref[...] = 1.0 - scale_ref[0] * logits


def _pick_tk(k_total, max_tk=8192):
    """Largest power-of-two K tile (<= max_tk) that divides k_total."""
    for tk in (8192, 4096, 2048, 1024, 512, 256, 128):
        if tk <= max_tk and k_total % tk == 0:
            return tk
    raise ValueError(f"K = {k_total} is not a multiple of 128")


def clip_image_loss(params, image1, image2, *, tk=None):
    b = image1.shape[0]
    w = params["w_fold_bf16"]                       # (K, Dp) bf16
    k_total, d_pad = w.shape

    # Stack both images into one LHS: doubles M per weight pass, one GEMM,
    # one normalization, one image BlockSpec.  Contiguous NCHW flatten.
    x = jnp.concatenate(
        [image1.reshape(b, k_total), image2.reshape(b, k_total)], axis=0)
    x = x.astype(jnp.bfloat16)                      # (2B, K)

    # exp(logit_scale) / 100 computed outside the kernel, passed via SMEM.
    scale = (jnp.exp(params["logit_scale"]) / 100.0).reshape(1)

    if tk is None:
        tk = _pick_tk(k_total)
    nk = k_total // tk

    cost = pl.CostEstimate(
        flops=2 * (2 * b) * k_total * d_pad + 2 * b * b * d_pad,
        transcendentals=0,
        bytes_accessed=(w.size * w.dtype.itemsize
                        + x.size * x.dtype.itemsize
                        + b * b * 4 + 4),
    )

    grid_spec = pltpu.PrefetchScalarGridSpec(
        num_scalar_prefetch=0,
        grid=(nk,),
        in_specs=[
            pl.BlockSpec((2 * b, tk), lambda k: (0, k)),            # images
            pl.BlockSpec((tk, d_pad), lambda k: (k, 0)),            # weight
            pl.BlockSpec(memory_space=pltpu.MemorySpace.SMEM),      # scale
        ],
        out_specs=pl.BlockSpec((b, b), lambda k: (0, 0)),
        scratch_shapes=[pltpu.VMEM((2 * b, d_pad), jnp.float32)],
    )

    return pl.pallas_call(
        _clip_image_loss_kernel,
        out_shape=jax.ShapeDtypeStruct((b, b), jnp.float32),
        grid_spec=grid_spec,
        compiler_params=pltpu.CompilerParams(
            dimension_semantics=("arbitrary",)),
        cost_estimate=cost,
    )(x, w, scale)


# ------------------------- pure-JAX reference (unfused) ---------------------

def _pool_reference(x, k):
    # nn.Upsample(scale_factor=7, nearest) + nn.AvgPool2d(kernel_size=k)
    up = jnp.repeat(jnp.repeat(x, UP_SCALE, axis=2), UP_SCALE, axis=3)
    b, c, h, w = up.shape
    return up.reshape(b, c, h // k, k, w // k, k).mean(axis=(3, 5))


def _encode_image_reference(pooled, w_img):
    # Synthetic stand-in for model.encode_image: 32x32 patches, flatten order
    # (channel, py, px), mean over the 7x7 patch grid, linear projection.
    b, c, o, _ = pooled.shape
    g = o // PATCH
    p = pooled.reshape(b, c, g, PATCH, g, PATCH)
    p = p.transpose(0, 2, 4, 1, 3, 5).reshape(b, g * g, c * PATCH * PATCH)
    return p.mean(axis=1) @ w_img


def clip_image_loss_reference(params, image1, image2):
    k = params["pool_k"]
    f1 = _encode_image_reference(_pool_reference(image1, k), params["w_img"])
    f2 = _encode_image_reference(_pool_reference(image2, k), params["w_img"])
    f1 = f1 / jnp.linalg.norm(f1, axis=1, keepdims=True)
    f2 = f2 / jnp.linalg.norm(f2, axis=1, keepdims=True)
    logits = jnp.exp(params["logit_scale"]) * (f1 @ f2.T)
    return 1.0 - logits / 100.0


# ----------------------------------- main -----------------------------------

if __name__ == "__main__":
    B, C, S, D = 2, 3, 64, 64   # StyleGAN_size = 64 -> AvgPool kernel 2

    key = jax.random.PRNGKey(0)
    k1, k2, k3 = jax.random.split(key, 3)
    image1 = jax.random.normal(k1, (B, C, S, S), jnp.float32)
    image2 = jax.random.normal(k2, (B, C, S, S), jnp.float32)
    params = build_params(k3, stylegan_size=S, channels=C, embed_dim=D)

    fn = jax.jit(functools.partial(clip_image_loss, params))
    out = jax.block_until_ready(fn(image1, image2))

    assert out.shape == (B, B) and out.dtype == jnp.float32
    ref = jax.block_until_ready(
        clip_image_loss_reference(params, image1, image2))
    # Error vs. the f32 reference is dominated by the bf16 weight/image cast;
    # the output is additionally damped by the /100 in the loss.
    err = float(jnp.max(jnp.abs(out - ref)))
    assert err < 1e-2, f"kernel/reference mismatch: max abs err = {err}"
    print("KERNEL_OK")
</pallas_src>

<mosaic_0001>
module attributes {stable_mosaic.version = 11 : i64} {
  func.func @_clip_image_loss_kernel(%arg0: i32, %arg1: memref<4x4096xbf16, #tpu.memory_space<vmem>>, %arg2: memref<4096x128xbf16, #tpu.memory_space<vmem>>, %arg3: memref<1xf32, #tpu.memory_space<smem>>, %arg4: memref<2x2xf32, #tpu.memory_space<vmem>>, %arg5: memref<4x128xf32, #tpu.memory_space<vmem>>) attributes {dimension_semantics = [#tpu.dimension_semantics<arbitrary>], iteration_bounds = array<i64: 3>, scalar_prefetch = 0 : i64, scratch_operands = 1 : i64, tpu.core_type = #tpu.core_type<tc>, window_params = [{transform_indices = @transform_0, window_bounds = array<i64: 4, 4096>}, {transform_indices = @transform_1, window_bounds = array<i64: 4096, 128>}, {transform_indices = @transform_2, window_bounds = array<i64: 1>}, {pipeline_mode = #tpu.pipeline_mode<synchronous>, transform_indices = @transform_3, window_bounds = array<i64: 2, 2>}]} {
    %c0_i32 = arith.constant 0 : i32
    %0 = arith.cmpi eq, %arg0, %c0_i32 : i32
    %1 = arith.extui %0 : i1 to i32
    %c0_i32_0 = arith.constant 0 : i32
    %2 = arith.cmpi ne, %1, %c0_i32_0 : i32
    scf.if %2 {
      %cst_9 = arith.constant 0.000000e+00 : f32
      %12 = vector.broadcast %cst_9 : f32 to vector<4x128xf32>
      %c0_10 = arith.constant 0 : index
      %c0_11 = arith.constant 0 : index
      %13 = vector.load %arg5[%c0_10, %c0_11] : memref<4x128xf32, #tpu.memory_space<vmem>>, vector<4x128xf32>
      tpu.vector_store %arg5[%c0_10, %c0_11], %12 {strides = array<i32>} : memref<4x128xf32, #tpu.memory_space<vmem>>, vector<4x128xf32>,
    } else {
    }
    %c0 = arith.constant 0 : index
    %c0_1 = arith.constant 0 : index
    %3 = vector.load %arg5[%c0, %c0_1] : memref<4x128xf32, #tpu.memory_space<vmem>>, vector<4x128xf32>
    %c0_2 = arith.constant 0 : index
    %c0_3 = arith.constant 0 : index
    %4 = vector.load %arg1[%c0_2, %c0_3] : memref<4x4096xbf16, #tpu.memory_space<vmem>>, vector<4x4096xbf16>
    %c0_4 = arith.constant 0 : index
    %c0_5 = arith.constant 0 : index
    %5 = vector.load %arg2[%c0_4, %c0_5] : memref<4096x128xbf16, #tpu.memory_space<vmem>>, vector<4096x128xbf16>
    %cst = arith.constant dense<0.000000e+00> : vector<4x128xf32>
    %6 = tpu.matmul %4, %5, %cst {dimension_numbers = #tpu.dot_dimension_numbers<[1], [0], [0], [1], [0, 0, 1, 1], [], []>} : vector<4x4096xbf16>, vector<4096x128xbf16>, vector<4x128xf32> -> vector<4x128xf32>
    %7 = arith.addf %3, %6 : vector<4x128xf32>
    %c0_6 = arith.constant 0 : index
    %c0_7 = arith.constant 0 : index
    %8 = vector.load %arg5[%c0_6, %c0_7] : memref<4x128xf32, #tpu.memory_space<vmem>>, vector<4x128xf32>
    tpu.vector_store %arg5[%c0_6, %c0_7], %7 {strides = array<i32>} : memref<4x128xf32, #tpu.memory_space<vmem>>, vector<4x128xf32>,
    %c2_i32 = arith.constant 2 : i32
    %9 = arith.cmpi eq, %arg0, %c2_i32 : i32
    %10 = arith.extui %9 : i1 to i32
    %c0_i32_8 = arith.constant 0 : i32
    %11 = arith.cmpi ne, %10, %c0_i32_8 : i32
    scf.if %11 {
      %c0_9 = arith.constant 0 : index
      %c0_10 = arith.constant 0 : index
      %12 = vector.load %arg5[%c0_9, %c0_10] : memref<4x128xf32, #tpu.memory_space<vmem>>, vector<4x128xf32>
      %13 = arith.mulf %12, %12 : vector<4x128xf32>
      %cst_11 = arith.constant dense<0.000000e+00> : vector<4xf32>
      %14 = vector.multi_reduction <add>, %13, %cst_11 [1] : vector<4x128xf32> to vector<4xf32>
      %15 = vector.shape_cast %14 : vector<4xf32> to vector<4x1xf32>
      %16 = math.rsqrt %15 : vector<4x1xf32>
      %17 = vector.broadcast %16 : vector<4x1xf32> to vector<4x128xf32>
      %18 = arith.mulf %12, %17 : vector<4x128xf32>
      %19 = vector.extract_strided_slice %18 {offsets = [0, 0], sizes = [2, 128], strides = [1, 1]} : vector<4x128xf32> to vector<2x128xf32>
      %20 = vector.extract_strided_slice %18 {offsets = [2, 0], sizes = [2, 128], strides = [1, 1]} : vector<4x128xf32> to vector<2x128xf32>
      %cst_12 = arith.constant dense<0.000000e+00> : vector<2x2xf32>
      %21 = tpu.matmul %19, %20, %cst_12 {dimension_numbers = #tpu.dot_dimension_numbers<[1], [1], [0], [0], [0, 0, 1, 0], [], []>} : vector<2x128xf32>, vector<2x128xf32>, vector<2x2xf32> -> vector<2x2xf32>
      %c0_13 = arith.constant 0 : index
      %22 = memref.load %arg3[%c0_13] : memref<1xf32, #tpu.memory_space<smem>>
      %23 = vector.broadcast %22 : f32 to vector<2x2xf32>
      %24 = arith.mulf %23, %21 : vector<2x2xf32>
      %cst_14 = arith.constant 1.000000e+00 : f32
      %25 = vector.broadcast %cst_14 : f32 to vector<2x2xf32>
      %26 = arith.subf %25, %24 : vector<2x2xf32>
      %c0_15 = arith.constant 0 : index
      %c0_16 = arith.constant 0 : index
      %27 = vector.load %arg4[%c0_15, %c0_16] : memref<2x2xf32, #tpu.memory_space<vmem>>, vector<2x2xf32>
      tpu.vector_store %arg4[%c0_15, %c0_16], %26 {strides = array<i32>} : memref<2x2xf32, #tpu.memory_space<vmem>>, vector<2x2xf32>,
    } else {
    }
    return
  }
  func.func @transform_0(%arg0: i32) -> (i32, i32) {
    %c0_i32 = arith.constant 0 : i32
    %c0_i32_0 = arith.constant 0 : i32
    return %c0_i32, %arg0 : i32, i32
  }
  func.func @transform_1(%arg0: i32) -> (i32, i32) {
    %c0_i32 = arith.constant 0 : i32
    %c0_i32_0 = arith.constant 0 : i32
    return %arg0, %c0_i32 : i32, i32
  }
  func.func @transform_2(%arg0: i32) -> i32 {
    %c0_i32 = arith.constant 0 : i32
    %c0_i32_0 = arith.constant 0 : i32
    return %c0_i32 : i32
  }
  func.func @transform_3(%arg0: i32) -> (i32, i32) {
    %c0_i32 = arith.constant 0 : i32
    %c0_i32_0 = arith.constant 0 : i32
    %c0_i32_1 = arith.constant 0 : i32
    return %c0_i32, %c0_i32_0 : i32, i32
  }
}

</mosaic_0001>

<bundles_post_ra>
// kernel: clip_image_loss.1
= control target key start
LH: loop header
LB: loop body
LE: loop exit
PB: predicated region body
PF: predicated region fallthrough
CT: control target
= control target key end

     0   :  { %s4718_s0 = inlined_call_operand.vmem [shape: bf16[4,12288], index: 0, kind: input, shape index: {}]   ;;  %s4719_s1 = inlined_call_operand.hbm [shape: bf16[12288,128], index: 1, kind: input, shape index: {}]   ;;  %s4720_s2 = inlined_call_operand.<no memory space> [shape: f32[1], index: 2, kind: input, shape index: {}]   ;;  %s4721_s3 = inlined_call_operand.hbm [shape: f32[2,2], index: 3, kind: output, shape index: {}]  }
   0x1   :  { %8 = sst [smem:[#allocation3]] %s4720_s2 }
   0x2   :  { %9 = vsyncpa [#allocation5], 0 }
   0x3   :  { %11 = vsyncpa [#allocation5 + $0x1], 0 }
   0x4   :  { %12 = vsyncpa [#allocation6], 0  ;;  %s4315_s14 = smov 0   ;;  %s4317_s15 = smov 0  }
   0x5   :  { %s4319_s16 = smov 0   ;;  %s4321_s17 = smov 0  }
   0x6 LB: > { %s4334_s2 = sadd.s32 4294967295, %s4282_s17   ;;  %s4337_s18 = sadd.s32 1, %s4282_s17   ;;  %s4282_s17 = sphi %s4321_s17, %s4730_s17   ;;  %s4278_s16 = sphi %s4319_s16, %s4729_s16   ;;  %s4274_s15 = sphi %s4317_s15, %s4728_s15   ;;  %s4270_s14 = sphi %s4315_s14, %s4727_s14  }
   0x7   : > { %s48_s19 = ssub.s32 %s4282_s17, %s4337_s18  ;;  %s51_s20 = sadd.s32 1, %s4278_s16 }
   0x8   : > { %p49_p0 = scmp.eq.s32.totalorder %s48_s19, 0  ;;  %p58_p1 = scmp.ne.s32.totalorder %s4278_s16, %s4274_s15 }
   0x9   : > { %p59_p2 = scmp.eq.s32.totalorder %s4282_s17, 0  ;;  %p64_p3 = scmp.ne.s32.totalorder %s4274_s15, %s4270_s14 }
   0xa   : > { %s4347_s21 = scalar_select %p49_p0, %s4278_s16, %s51_s20  }
   0xb   : > { %p60_p4 = por %p59_p2, %p58_p1  ;;  %p65_p5 = scmp.eq.s32.totalorder %s4334_s2, 0 }
   0xc   : > { %p3884_p6 = scmp.lt.s32.totalorder %s4282_s17, 3  ;;  %s142_s23 = sand.u32 1, %s4278_s16  }
   0xd   : > { %p4351_p7 = por %p65_p5, %p64_p3  ;;  %s3245_s24 = sshll.u32 %s142_s23, 11 }
   0xe   : > { %s3514_s25 = sshll.u32 %s4282_s17, 15  ;;  %s146_s29 = scalar_lea.vmem [#allocation4], %s3245_s24 }
   0xf   : > { %s4723_s22 = scalar_select %p4351_p7, 1, 0 }
  0x10   : > { %s4360_s28 = scalar_lea.hbm %s4719_s1, %s3514_s25  ;;  %s153_s30 = sshll.u32 %s146_s29, 4  ;;  %s4362_s30 = int_to_ptr.vmem [resolvable:$true] %s153_s30 }
  0x11   : > { %p4364_p8 = pnand %p3884_p6, %p60_p4  ;;  %s4369_s5 = scalar_lea.sflag [#allocation5], %s142_s23 }
  0x12   : > { %s4192_s6 = scalar_lea.hbm %s4360_s28, 32768  ;;  %s4197_s9 = scalar_lea.hbm %s4719_s1, 98304 }
  0x13   : > { %p4193_p10 = scmp.ne.s32.totalorder %s4360_s28, %s4192_s6  ;;  %p4194_p11 = pneg %p4364_p8 }
  0x14   : > { %p4198_p0 = scmp.lt.s32.totalorder %s4360_s28, %s4719_s1  ;;  %p4199_p1 = scmp.lt.s32.totalorder %s4197_s9, %s4192_s6 }
  0x15   : > { %p4195_p12 = pnand %p4194_p11, %p4193_p10 }
  0x16   : > { %p4200_p2 = por %p4199_p1, %p4198_p0 }
  0x17   : > { %p4196_p13 = pneg %p4195_p12 }
  0x19   : > { %p4201_p3 = pnand %p4200_p2, %p4196_p13 }
  0x1b   : > { %4204 = shalt.err (!%p4201_p3)
}
  0x1c   : > { %s4205_s12 = scalar_lea.vmem %s4362_s30, 32768  ;;  %s4284_s13 = smov [#allocation4]  }
  0x1d   : > { %p4206_p4 = scmp.ne.s32.totalorder %s4362_s30, %s4205_s12  ;;  %s4210_s14 = sshll.u32 %s4284_s13, 4  ;;  %s4211_s14 = int_to_ptr.vmem [resolvable:$false] %s4210_s14 }
  0x1e   : > { %s4212_s19 = scalar_lea.vmem %s4211_s14, 65536  ;;  %p4213_p10 = scmp.lt.s32.totalorder %s4362_s30, %s4211_s14 }
  0x1f   : > { %p4208_p5 = pnand %p4206_p4, %p4194_p11  ;;  %p4214_p12 = scmp.lt.s32.totalorder %s4212_s19, %s4205_s12 }
  0x21   : > { %p4209_p6 = pneg %p4208_p5  ;;  %p4215_p9 = por %p4214_p12, %p4213_p10 }
  0x23   : > { %p4216_p7 = pnand %p4215_p9, %p4209_p6 }
  0x25   : > { %4219 = shalt.err (!%p4216_p7)
}
  0x26   : > { %s4285_s20 = smov 64   ;;  %s4286_s23 = smov 4  }
  0x27   : > { %3883 = dma.hbm_to_vmem [thread:$0]  (!%p4364_p8), %s4360_s28, 32768, %s4362_s30, %s4369_s5, %s4285_s20, %s4285_s20, %s4286_s23  }
  0x28   : > { %p161_p11 = scmp.lt.s32.totalorder %s4282_s17, 4  ;;  %p4725_p13 = scmp.ge.s32.totalorder %s4282_s17, 1 }
  0x2a   : > { %p162_p0 = pnand %p4725_p13, %p161_p11 }
  0x2b   : > { %s167_s24 = sand.u32 (!%p162_p0), 1, %s4274_s15   ;;  %p4726_p7 = scmp.ne.s32.totalorder (!%p162_p0), %s4723_s22, 0 }
  0x2c   : > { %165 = sbr.rel (%p162_p0) target bundleno = 903 (0x387), region = 32  ;;  %s3249_s25 = sshll.u32 (!%p162_p0), %s167_s24, 11 }
  0x2d   : > { %s168_s26 = scalar_lea.sflag (!%p162_p0), [#allocation5], %s167_s24  ;;  %s4394_s27 = scalar_lea.vmem (!%p162_p0), [#allocation4], %s3249_s25 }
  0x31   : > { %4261 = dma.done.wait (%p4726_p7), %s168_s26, 32768  }
  0x32   : > { %4263 = vsyncadd (%p4726_p7), %s168_s26, 4294934528  ;;  %s3250_s29 = sshll.u32 %s4334_s2, 5  ;;  %p3252_p8 = scmp.ne.s32.totalorder %s4334_s2, 0 }
  0x33   : > { %p195_p9 = scmp.lt.s32.totalorder %s3250_s29, 95 }
  0x34   : > { %205 = sbr.rel (%p3252_p8) target bundleno = 59 (0x3b), region = 40 }
  0x35   : > { %s4732_s29 = smov (!%p195_p9, %s3250_s29), 95 }
  0x36   : > { %s3251_s28 = sshll.u32 %s4732_s29, 1 }
  0x37   : > { %s4404_s4 = scalar_lea.vmem %s4718_s0, %s3251_s28 }
  0x39   : > { %v4287_v0 = vmov 0.0  }
  0x3a   : > { %206 = vst [vmem:[#allocation2] sm:$0xf] %v4287_v0 }
  0x3b PF: > { %v3926_v1 = vld [vmem:[%s4394_s27 + $0x78] sm:$0xff]   ;;  %v3930_v5 = vld [vmem:[%s4394_s27 + $0x70] sm:$0xff]   ;;  %v3934_v9 = vld [vmem:[%s4394_s27 + $0x68] sm:$0xff]   ;;  %v740_v29 = vlaneseq  ;;  %v4288_v37 = vmov 1983009808   ;;  %p3509_p1 = scmp.ne.s32.totalorder %s4334_s2, 2 }
  0x3c   : > { %v3927_v2 = vld [vmem:[%s4394_s27 + $0xf8] sm:$0xff]   ;;  %3515 = vmatprep.subr.bf16.mxu0 %v3926_v1  ;;  %v3931_v6 = vld [vmem:[%s4394_s27 + $0xf0] sm:$0xff]   ;;  %v3935_v10 = vld [vmem:[%s4394_s27 + $0xe8] sm:$0xff]   ;;  %v738_v38 = vunpack.c.l.s4 %v4288_v37  ;;  %s3167_s22 = sld [smem:[#allocation3]] (!%p3509_p1) }
  0x3d   : > { %v3928_v3 = vld [vmem:[%s4394_s27 + $0x38] sm:$0xff]   ;;  %3537 = vmatprep.subr.bf16.mxu1 %v3927_v2  ;;  %v3932_v7 = vld [vmem:[%s4394_s27 + $0x30] sm:$0xff]   ;;  %v3936_v11 = vld [vmem:[%s4394_s27 + $0x28] sm:$0xff]   ;;  %v741_v34 = vshrl.u32 %v740_v29, 7 }
  0x3e   : > { %v3929_v4 = vld [vmem:[%s4394_s27 + $0xb8] sm:$0xff]   ;;  %3516 = vmatpush3.bf16.msra.mxu0 %v3928_v3  ;;  %v3933_v8 = vld [vmem:[%s4394_s27 + $0xb0] sm:$0xff]   ;;  %v3937_v12 = vld [vmem:[%s4394_s27 + $0xa8] sm:$0xff]   ;;  %v739_v40 = vunpack.c.0.s8 %v738_v38 }
  0x3f   : > { %3538 = vmatpush3.bf16.msra.mxu1 %v3929_v4  ;;  %3517 = vmatprep.subr.bf16.mxu0 %v3930_v5  ;;  %v3938_v13 = vld [vmem:[%s4394_s27 + $0x60] sm:$0xff]   ;;  %v3942_v17 = vld [vmem:[%s4394_s27 + $0x58] sm:$0xff]   ;;  %v3946_v21 = vld [vmem:[%s4394_s27 + $0x50] sm:$0xff]  }
  0x40   : > { %3539 = vmatprep.subr.bf16.mxu1 %v3931_v6  ;;  %v3939_v14 = vld [vmem:[%s4394_s27 + $0xe0] sm:$0xff]   ;;  %v3943_v18 = vld [vmem:[%s4394_s27 + $0xd8] sm:$0xff]   ;;  %v3947_v22 = vld [vmem:[%s4394_s27 + $0xd0] sm:$0xff]   ;;  %v4442_v42 = vsub.s32 %v739_v40, %v741_v34 }
  0x41   : > { %v3940_v15 = vld [vmem:[%s4394_s27 + $0x20] sm:$0xff]   ;;  %v3944_v19 = vld [vmem:[%s4394_s27 + $0x18] sm:$0xff]   ;;  %v3948_v23 = vld [vmem:[%s4394_s27 + $0x10] sm:$0xff]  }
  0x42   : > { %3518 = vmatpush3.bf16.msra.mxu0 %v3932_v7  ;;  %v3941_v16 = vld [vmem:[%s4394_s27 + $0xa0] sm:$0xff]   ;;  %v3945_v20 = vld [vmem:[%s4394_s27 + $0x98] sm:$0xff]   ;;  %v3949_v24 = vld [vmem:[%s4394_s27 + $0x90] sm:$0xff]  }
  0x43   : > { %3540 = vmatpush3.bf16.msra.mxu1 %v3933_v8  ;;  %3519 = vmatprep.subr.bf16.mxu0 %v3934_v9  ;;  %v3950_v25 = vld [vmem:[%s4394_s27 + $0x48] sm:$0xff]   ;;  %v3954_v30 = vld [vmem:[%s4394_s27 + $0x40] sm:$0xff]   ;;  %v3959_v36 = vld [vmem:[%s4394_s27 + $0x178] sm:$0xff]  }
  0x44   : > { %3541 = vmatprep.subr.bf16.mxu1 %v3935_v10  ;;  %v3951_v26 = vld [vmem:[%s4394_s27 + $0xc8] sm:$0xff]   ;;  %v3955_v31 = vld [vmem:[%s4394_s27 + $0xc0] sm:$0xff]   ;;  %v3960_v39 = vld [vmem:[%s4394_s27 + $0x1f8] sm:$0xff]  }
  0x45   : > { %v3952_v27 = vld [vmem:[%s4394_s27 + $0x8] sm:$0xff]   ;;  %v3956_v32 = vld [vmem:[%s4394_s27] sm:$0xff]   ;;  %v3961_v45 = vld [vmem:[%s4394_s27 + $0x138] sm:$0xff]  }
  0x46   : > { %3520 = vmatpush3.bf16.msra.mxu0 %v3936_v11  ;;  %v3953_v28 = vld [vmem:[%s4394_s27 + $0x88] sm:$0xff]   ;;  %v3957_v33 = vld [vmem:[%s4394_s27 + $0x80] sm:$0xff]   ;;  %v3962_v46 = vld [vmem:[%s4394_s27 + $0x1b8] sm:$0xff]  }
  0x47   : > { %3542 = vmatpush3.bf16.msra.mxu1 %v3937_v12  ;;  %3521 = vmatprep.subr.bf16.mxu0 %v3938_v13  ;;  %v208_v35 = vld [vmem:[%s4404_s4] sm:$0xff]  ;;  %v3963_v49 = vld [vmem:[%s4394_s27 + $0x170] sm:$0xff]   ;;  %v3967_v53 = vld [vmem:[%s4394_s27 + $0x168] sm:$0xff]  }
  0x48   : > { %3543 = vmatprep.subr.bf16.mxu1 %v3939_v14  ;;  %v736_v41 = vcombine.high %v208_v35, %v208_v35  ;;  %v743_v43 = vrot.slane %v208_v35, %v4442_v42  ;;  %v3964_v50 = vld [vmem:[%s4394_s27 + $0x1f0] sm:$0xff]   ;;  %v3968_v54 = vld [vmem:[%s4394_s27 + $0x1e8] sm:$0xff]   ;;  %v3971_v57 = vld [vmem:[%s4394_s27 + $0x160] sm:$0xff]  }
  0x49   : > { %v3965_v51 = vld [vmem:[%s4394_s27 + $0x130] sm:$0xff]   ;;  %v3969_v55 = vld [vmem:[%s4394_s27 + $0x128] sm:$0xff]   ;;  %v3972_v58 = vld [vmem:[%s4394_s27 + $0x1e0] sm:$0xff]  }
  0x4a   : > { %3522 = vmatpush3.bf16.msra.mxu0 %v3940_v15  ;;  %v750_v44 = vrot.slane %v736_v41, %v4442_v42  ;;  %v751_v47 = vcombine.high %v743_v43, %v743_v43  ;;  %v3966_v52 = vld [vmem:[%s4394_s27 + $0x1b0] sm:$0xff]   ;;  %v3970_v56 = vld [vmem:[%s4394_s27 + $0x1a8] sm:$0xff]   ;;  %v3973_v59 = vld [vmem:[%s4394_s27 + $0x120] sm:$0xff]  }
  0x4b   : > { %3544 = vmatpush3.bf16.msra.mxu1 %v3941_v16  ;;  %3523 = vmatprep.subr.bf16.mxu0 %v3942_v17  ;;  %v3974_v60 = vld [vmem:[%s4394_s27 + $0x1a0] sm:$0xff]   ;;  %v3975_v61 = vld [vmem:[%s4394_s27 + $0x158] sm:$0xff]   ;;  %v3979_v1 = vld [vmem:[%s4394_s27 + $0x150] sm:$0xff]  }
  0x4c   : > { %3545 = vmatprep.subr.bf16.mxu1 %v3943_v18  ;;  %v752_v48 = vcombine.high %v750_v44, %v750_v44  ;;  %2472 = vmatprep.mubr.bf16.mxu0 %v751_v47  ;;  %v3976_v62 = vld [vmem:[%s4394_s27 + $0x1d8] sm:$0xff]   ;;  %v3980_v2 = vld [vmem:[%s4394_s27 + $0x1d0] sm:$0xff]   ;;  %v3983_v5 = vld [vmem:[%s4394_s27 + $0x148] sm:$0xff]  }
  0x4d   : > { %v3977_v63 = vld [vmem:[%s4394_s27 + $0x118] sm:$0xff]   ;;  %v3981_v3 = vld [vmem:[%s4394_s27 + $0x110] sm:$0xff]   ;;  %v3984_v6 = vld [vmem:[%s4394_s27 + $0x1c8] sm:$0xff]  }
  0x4e   : > { %3524 = vmatpush3.bf16.msra.mxu0 %v3944_v19  ;;  %2512 = vmatprep.mubr.bf16.mxu1 %v752_v48  ;;  %v3978_v0 = vld [vmem:[%s4394_s27 + $0x198] sm:$0xff]   ;;  %v3982_v4 = vld [vmem:[%s4394_s27 + $0x190] sm:$0xff]   ;;  %v3985_v7 = vld [vmem:[%s4394_s27 + $0x108] sm:$0xff]  }
  0x4f   : > { %3546 = vmatpush3.bf16.msra.mxu1 %v3945_v20  ;;  %3525 = vmatprep.subr.bf16.mxu0 %v3946_v21  ;;  %v3986_v8 = vld [vmem:[%s4394_s27 + $0x188] sm:$0xff]   ;;  %v3987_v10 = vld [vmem:[%s4394_s27 + $0x140] sm:$0xff]   ;;  %v3992_v19 = vld [vmem:[%s4394_s27 + $0x278] sm:$0xff]  }
  0x50   : > { %3547 = vmatprep.subr.bf16.mxu1 %v3947_v22  ;;  %v209_v9 = vld [vmem:[%s4404_s4 + $0x8] sm:$0xff]  ;;  %v3993_v20 = vld [vmem:[%s4394_s27 + $0x2f8] sm:$0xff]   ;;  %v4013_v40 = vld [vmem:[%s4394_s27 + $0x2d0] sm:$0xff]  }
  0x51   : > { %v760_v11 = vrot.slane %v209_v9, %v4442_v42  ;;  %v753_v12 = vcombine.high %v209_v9, %v209_v9  ;;  %v3988_v13 = vld [vmem:[%s4394_s27 + $0x1c0] sm:$0xff]   ;;  %v3994_v21 = vld [vmem:[%s4394_s27 + $0x238] sm:$0xff]   ;;  %v4002_v29 = vld [vmem:[%s4394_s27 + $0x228] sm:$0xff]  }
  0x52   : > { %3526 = vmatpush3.bf16.msra.mxu0 %v3948_v23  ;;  %v3989_v14 = vld [vmem:[%s4394_s27 + $0x100] sm:$0xff]   ;;  %v3995_v22 = vld [vmem:[%s4394_s27 + $0x2b8] sm:$0xff]   ;;  %v3996_v23 = vld [vmem:[%s4394_s27 + $0x270] sm:$0xff]  }
  0x53   : > { %3548 = vmatpush3.bf16.msra.mxu1 %v3949_v24  ;;  %3527 = vmatprep.subr.bf16.mxu0 %v3950_v25  ;;  %v768_v15 = vcombine.high %v760_v11, %v760_v11  ;;  %v767_v16 = vrot.slane %v753_v12, %v4442_v42  ;;  %v3990_v17 = vld [vmem:[%s4394_s27 + $0x180] sm:$0xff]   ;;  %v3997_v24 = vld [vmem:[%s4394_s27 + $0x2f0] sm:$0xff]   ;;  %v4008_v35 = vld [vmem:[%s4394_s27 + $0x258] sm:$0xff]  }
  0x54   : > { %3549 = vmatprep.subr.bf16.mxu1 %v3951_v26  ;;  %v3998_v25 = vld [vmem:[%s4394_s27 + $0x230] sm:$0xff]   ;;  %v4007_v34 = vld [vmem:[%s4394_s27 + $0x2a0] sm:$0xff]   ;;  %v4010_v37 = vld [vmem:[%s4394_s27 + $0x218] sm:$0xff]  }
  0x55   : > { %v769_v18 = vcombine.high %v767_v16, %v767_v16  ;;  %v3999_v26 = vld [vmem:[%s4394_s27 + $0x2b0] sm:$0xff]   ;;  %v4011_v38 = vld [vmem:[%s4394_s27 + $0x298] sm:$0xff]   ;;  %v4019_v47 = vld [vmem:[%s4394_s27 + $0x288] sm:$0xff]  }
  0x56   : > { %3528 = vmatpush3.bf16.msra.mxu0 %v3952_v27  ;;  %v4000_v27 = vld [vmem:[%s4394_s27 + $0x268] sm:$0xff]   ;;  %v4014_v41 = vld [vmem:[%s4394_s27 + $0x210] sm:$0xff]   ;;  %v4040_v9 = vld [vmem:[%s4394_s27 + $0x3a0] sm:$0xff]  }
  0x57   : > { %3550 = vmatpush3.bf16.msra.mxu1 %v3953_v28  ;;  %3529 = vmatprep.subr.bf16.mxu0 %v3954_v30  ;;  %v4001_v28 = vld [vmem:[%s4394_s27 + $0x2e8] sm:$0xff]   ;;  %v4043_v12 = vld [vmem:[%s4394_s27 + $0x318] sm:$0xff]  }
  0x58   : > { %3551 = vmatprep.subr.bf16.mxu1 %v3955_v31  ;;  %v4003_v30 = vld [vmem:[%s4394_s27 + $0x2a8] sm:$0xff]   ;;  %v4004_v31 = vld [vmem:[%s4394_s27 + $0x260] sm:$0xff]  }
  0x59   : > { %v210_v48 = vld [vmem:[%s4404_s4 + $0x10] sm:$0xff] }
  0x5a   : > { %3530 = vmatpush3.bf16.msra.mxu0 %v3956_v32  ;;  %v4005_v32 = vld [vmem:[%s4394_s27 + $0x2e0] sm:$0xff]  }
  0x5b   : > { %3552 = vmatpush3.bf16.msra.mxu1 %v3957_v33  ;;  %3559 = vmatprep.subr.bf16.mxu0 %v3959_v36  ;;  %v4006_v33 = vld [vmem:[%s4394_s27 + $0x220] sm:$0xff]   ;;  %v4009_v36 = vld [vmem:[%s4394_s27 + $0x2d8] sm:$0xff]  }
  0x5c   : > { %3581 = vmatprep.subr.bf16.mxu1 %v3960_v39  ;;  %v4012_v39 = vld [vmem:[%s4394_s27 + $0x250] sm:$0xff]  }
  0x5d   : > { %2473 = vmatmul.mubr.bf16.vlgmr.msra.gmra.mxu0 %v743_v43  ;;  %v4015_v43 = vld [vmem:[%s4394_s27 + $0x290] sm:$0xff]  }
  0x5e   : > { %2513 = vmatmul.mubr.bf16.vlgmr.msra.gmra.mxu1 %v750_v44  ;;  %3560 = vmatpush3.bf16.msra.mxu0 %v3961_v45  ;;  %v4016_v44 = vld [vmem:[%s4394_s27 + $0x248] sm:$0xff]  }
  0x5f   : > { %3582 = vmatpush3.bf16.msra.mxu1 %v3962_v46  ;;  %3561 = vmatprep.subr.bf16.mxu0 %v3963_v49  ;;  %v4017_v45 = vld [vmem:[%s4394_s27 + $0x2c8] sm:$0xff]   ;;  %v4020_v49 = vld [vmem:[%s4394_s27 + $0x240] sm:$0xff]  }
  0x60   : > { %3583 = vmatprep.subr.bf16.mxu1 %v3964_v50  ;;  %2552 = vmatprep.mubr.bf16.mxu0 %v768_v15  ;;  %v4018_v46 = vld [vmem:[%s4394_s27 + $0x208] sm:$0xff]   ;;  %v777_v50 = vrot.slane %v210_v48, %v4442_v42  ;;  %v4046_v15 = vld [vmem:[%s4394_s27 + $0x3d0] sm:$0xff]  }
  0x61   : > { %2592 = vmatprep.mubr.bf16.mxu1 %v769_v18  ;;  %v4049_v18 = vld [vmem:[%s4394_s27 + $0x348] sm:$0xff]  }
  0x62   : > { %3562 = vmatpush3.bf16.msra.mxu0 %v3965_v51  ;;  %v770_v51 = vcombine.high %v210_v48, %v210_v48  ;;  %v4073_v48 = vld [vmem:[%s4394_s27 + $0x4a0] sm:$0xff]  }
  0x63   : > { %3584 = vmatpush3.bf16.msra.mxu1 %v3966_v52  ;;  %3563 = vmatprep.subr.bf16.mxu0 %v3967_v53  ;;  %v4021_v52 = vld [vmem:[%s4394_s27 + $0x2c0] sm:$0xff]  }
  0x64   : > { %3585 = vmatprep.subr.bf16.mxu1 %v3968_v54  ;;  %v4022_v53 = vld [vmem:[%s4394_s27 + $0x200] sm:$0xff]   ;;  %v785_v54 = vcombine.high %v777_v50, %v777_v50 }
  0x66   : > { %3564 = vmatpush3.bf16.msra.mxu0 %v3969_v55  ;;  %v784_v55 = vrot.slane %v770_v51, %v4442_v42  ;;  %v4076_v51 = vld [vmem:[%s4394_s27 + $0x418] sm:$0xff]  }
  0x67   : > { %3586 = vmatpush3.bf16.msra.mxu1 %v3970_v56  ;;  %3565 = vmatprep.subr.bf16.mxu0 %v3971_v57  ;;  %v4023_v56 = vld [vmem:[%s4394_s27 + $0x280] sm:$0xff]  }
  0x68   : > { %3587 = vmatprep.subr.bf16.mxu1 %v3972_v58  ;;  %v786_v57 = vcombine.high %v784_v55, %v784_v55  ;;  %v4025_v58 = vld [vmem:[%s4394_s27 + $0x378] sm:$0xff]  }
  0x6a   : > { %3566 = vmatpush3.bf16.msra.mxu0 %v3973_v59  ;;  %v4026_v59 = vld [vmem:[%s4394_s27 + $0x3f8] sm:$0xff]  }
  0x6b   : > { %3588 = vmatpush3.bf16.msra.mxu1 %v3974_v60  ;;  %3567 = vmatprep.subr.bf16.mxu0 %v3975_v61  ;;  %v4027_v60 = vld [vmem:[%s4394_s27 + $0x338] sm:$0xff]  }
  0x6c   : > { %3589 = vmatprep.subr.bf16.mxu1 %v3976_v62  ;;  %v4028_v61 = vld [vmem:[%s4394_s27 + $0x3b8] sm:$0xff]   ;;  %v4029_v62 = vld [vmem:[%s4394_s27 + $0x370] sm:$0xff]  }
  0x6e   : > { %3568 = vmatpush3.bf16.msra.mxu0 %v3977_v63  ;;  %v4030_v63 = vld [vmem:[%s4394_s27 + $0x3f0] sm:$0xff]  }
  0x6f   : > { %3590 = vmatpush3.bf16.msra.mxu1 %v3978_v0  ;;  %3569 = vmatprep.subr.bf16.mxu0 %v3979_v1  ;;  %v4031_v0 = vld [vmem:[%s4394_s27 + $0x330] sm:$0xff]  }
  0x70   : > { %3591 = vmatprep.subr.bf16.mxu1 %v3980_v2  ;;  %v4032_v1 = vld [vmem:[%s4394_s27 + $0x3b0] sm:$0xff]   ;;  %v4033_v2 = vld [vmem:[%s4394_s27 + $0x368] sm:$0xff]  }
  0x72   : > { %3570 = vmatpush3.bf16.msra.mxu0 %v3981_v3  ;;  %v4034_v3 = vld [vmem:[%s4394_s27 + $0x3e8] sm:$0xff]  }
  0x73   : > { %3592 = vmatpush3.bf16.msra.mxu1 %v3982_v4  ;;  %3571 = vmatprep.subr.bf16.mxu0 %v3983_v5  ;;  %v4035_v4 = vld [vmem:[%s4394_s27 + $0x328] sm:$0xff]  }
  0x74   : > { %3593 = vmatprep.subr.bf16.mxu1 %v3984_v6  ;;  %v4036_v5 = vld [vmem:[%s4394_s27 + $0x3a8] sm:$0xff]   ;;  %v4037_v6 = vld [vmem:[%s4394_s27 + $0x360] sm:$0xff]  }
  0x76   : > { %3572 = vmatpush3.bf16.msra.mxu0 %v3985_v7  ;;  %v4038_v7 = vld [vmem:[%s4394_s27 + $0x3e0] sm:$0xff]  }
  0x77   : > { %3594 = vmatpush3.bf16.msra.mxu1 %v3986_v8  ;;  %3573 = vmatprep.subr.bf16.mxu0 %v3987_v10  ;;  %v4039_v8 = vld [vmem:[%s4394_s27 + $0x320] sm:$0xff]   ;;  %v4041_v10 = vld [vmem:[%s4394_s27 + $0x358] sm:$0xff]  }
  0x78   : > { %3595 = vmatprep.subr.bf16.mxu1 %v3988_v13  ;;  %v4044_v13 = vld [vmem:[%s4394_s27 + $0x398] sm:$0xff]  }
  0x7a   : > { %3574 = vmatpush3.bf16.msra.mxu0 %v3989_v14  ;;  %v4045_v14 = vld [vmem:[%s4394_s27 + $0x350] sm:$0xff]  }
  0x7b   : > { %3596 = vmatpush3.bf16.msra.mxu1 %v3990_v17  ;;  %3603 = vmatprep.subr.bf16.mxu0 %v3992_v19  ;;  %v4048_v17 = vld [vmem:[%s4394_s27 + $0x390] sm:$0xff]   ;;  %v4050_v19 = vld [vmem:[%s4394_s27 + $0x3c8] sm:$0xff]  }
  0x7c   : > { %3625 = vmatprep.subr.bf16.mxu1 %v3993_v20  ;;  %v4051_v20 = vld [vmem:[%s4394_s27 + $0x308] sm:$0xff]  }
  0x7d   : > { %2553 = vmatmul.mubr.bf16.vlgmr.msra.gmra.mxu0 %v760_v11  ;;  %v4042_v11 = vld [vmem:[%s4394_s27 + $0x3d8] sm:$0xff]  }
  0x7e   : > { %2593 = vmatmul.mubr.bf16.vlgmr.msra.gmra.mxu1 %v767_v16  ;;  %3604 = vmatpush3.bf16.msra.mxu0 %v3994_v21  ;;  %v4047_v16 = vld [vmem:[%s4394_s27 + $0x310] sm:$0xff]   ;;  %v4052_v21 = vld [vmem:[%s4394_s27 + $0x388] sm:$0xff]  }
  0x7f   : > { %3626 = vmatpush3.bf16.msra.mxu1 %v3995_v22  ;;  %3605 = vmatprep.subr.bf16.mxu0 %v3996_v23  ;;  %v4053_v22 = vld [vmem:[%s4394_s27 + $0x340] sm:$0xff]   ;;  %v211_v23 = vld [vmem:[%s4404_s4 + $0x18] sm:$0xff] }
  0x80   : > { %3627 = vmatprep.subr.bf16.mxu1 %v3997_v24  ;;  %2632 = vmatprep.mubr.bf16.mxu0 %v785_v54  ;;  %v4054_v24 = vld [vmem:[%s4394_s27 + $0x3c0] sm:$0xff]   ;;  %v4079_v54 = vld [vmem:[%s4394_s27 + $0x4d0] sm:$0xff]  }
  0x81   : > { %2672 = vmatprep.mubr.bf16.mxu1 %v786_v57  ;;  %v4082_v57 = vld [vmem:[%s4394_s27 + $0x448] sm:$0xff]  }
  0x82   : > { %3606 = vmatpush3.bf16.msra.mxu0 %v3998_v25  ;;  %v794_v25 = vrot.slane %v211_v23, %v4442_v42 }
  0x83   : > { %3628 = vmatpush3.bf16.msra.mxu1 %v3999_v26  ;;  %3607 = vmatprep.subr.bf16.mxu0 %v4000_v27  ;;  %v787_v26 = vcombine.high %v211_v23, %v211_v23  ;;  %v4055_v27 = vld [vmem:[%s4394_s27 + $0x300] sm:$0xff]   ;;  %v4107_v23 = vld [vmem:[%s4394_s27 + $0x558] sm:$0xff]  }
  0x84   : > { %3629 = vmatprep.subr.bf16.mxu1 %v4001_v28  ;;  %v4056_v28 = vld [vmem:[%s4394_s27 + $0x380] sm:$0xff]  }
  0x86   : > { %3608 = vmatpush3.bf16.msra.mxu0 %v4002_v29  ;;  %v802_v29 = vcombine.high %v794_v25, %v794_v25 }
  0x87   : > { %3630 = vmatpush3.bf16.msra.mxu1 %v4003_v30  ;;  %3609 = vmatprep.subr.bf16.mxu0 %v4004_v31  ;;  %v801_v30 = vrot.slane %v787_v26, %v4442_v42  ;;  %v4058_v31 = vld [vmem:[%s4394_s27 + $0x478] sm:$0xff]  }
  0x88   : > { %3631 = vmatprep.subr.bf16.mxu1 %v4005_v32  ;;  %v4110_v26 = vld [vmem:[%s4394_s27 + $0x598] sm:$0xff]  }
  0x89   : > { %v803_v32 = vcombine.high %v801_v30, %v801_v30 }
  0x8a   : > { %3610 = vmatpush3.bf16.msra.mxu0 %v4006_v33  ;;  %v4059_v33 = vld [vmem:[%s4394_s27 + $0x4f8] sm:$0xff]  }
  0x8b   : > { %3632 = vmatpush3.bf16.msra.mxu1 %v4007_v34  ;;  %3611 = vmatprep.subr.bf16.mxu0 %v4008_v35  ;;  %v4060_v34 = vld [vmem:[%s4394_s27 + $0x438] sm:$0xff]  }
  0x8c   : > { %3633 = vmatprep.subr.bf16.mxu1 %v4009_v36  ;;  %v4061_v35 = vld [vmem:[%s4394_s27 + $0x4b8] sm:$0xff]   ;;  %v4062_v36 = vld [vmem:[%s4394_s27 + $0x470] sm:$0xff]  }
  0x8e   : > { %3612 = vmatpush3.bf16.msra.mxu0 %v4010_v37  ;;  %v4063_v37 = vld [vmem:[%s4394_s27 + $0x4f0] sm:$0xff]  }
  0x8f   : > { %3634 = vmatpush3.bf16.msra.mxu1 %v4011_v38  ;;  %3613 = vmatprep.subr.bf16.mxu0 %v4012_v39  ;;  %v4064_v38 = vld [vmem:[%s4394_s27 + $0x430] sm:$0xff]  }
  0x90   : > { %3635 = vmatprep.subr.bf16.mxu1 %v4013_v40  ;;  %v4065_v39 = vld [vmem:[%s4394_s27 + $0x4b0] sm:$0xff]   ;;  %v4066_v40 = vld [vmem:[%s4394_s27 + $0x468] sm:$0xff]  }
  0x92   : > { %3614 = vmatpush3.bf16.msra.mxu0 %v4014_v41  ;;  %v4067_v41 = vld [vmem:[%s4394_s27 + $0x4e8] sm:$0xff]  }
  0x93   : > { %3636 = vmatpush3.bf16.msra.mxu1 %v4015_v43  ;;  %3615 = vmatprep.subr.bf16.mxu0 %v4016_v44  ;;  %v4068_v43 = vld [vmem:[%s4394_s27 + $0x428] sm:$0xff]  }
  0x94   : > { %3637 = vmatprep.subr.bf16.mxu1 %v4017_v45  ;;  %v4069_v44 = vld [vmem:[%s4394_s27 + $0x4a8] sm:$0xff]   ;;  %v4070_v45 = vld [vmem:[%s4394_s27 + $0x460] sm:$0xff]  }
  0x96   : > { %3616 = vmatpush3.bf16.msra.mxu0 %v4018_v46  ;;  %v4071_v46 = vld [vmem:[%s4394_s27 + $0x4e0] sm:$0xff]  }
  0x97   : > { %3638 = vmatpush3.bf16.msra.mxu1 %v4019_v47  ;;  %3617 = vmatprep.subr.bf16.mxu0 %v4020_v49  ;;  %v4072_v47 = vld [vmem:[%s4394_s27 + $0x420] sm:$0xff]   ;;  %v4074_v49 = vld [vmem:[%s4394_s27 + $0x458] sm:$0xff]  }
  0x98   : > { %3639 = vmatprep.subr.bf16.mxu1 %v4021_v52  ;;  %v4077_v52 = vld [vmem:[%s4394_s27 + $0x498] sm:$0xff]  }
  0x9a   : > { %3618 = vmatpush3.bf16.msra.mxu0 %v4022_v53  ;;  %v4078_v53 = vld [vmem:[%s4394_s27 + $0x450] sm:$0xff]  }
  0x9b   : > { %3640 = vmatpush3.bf16.msra.mxu1 %v4023_v56  ;;  %3647 = vmatprep.subr.bf16.mxu0 %v4025_v58  ;;  %v4081_v56 = vld [vmem:[%s4394_s27 + $0x490] sm:$0xff]   ;;  %v4083_v58 = vld [vmem:[%s4394_s27 + $0x4c8] sm:$0xff]  }
  0x9c   : > { %3669 = vmatprep.subr.bf16.mxu1 %v4026_v59  ;;  %v4084_v59 = vld [vmem:[%s4394_s27 + $0x408] sm:$0xff]  }
  0x9d   : > { %2633 = vmatmul.mubr.bf16.vlgmr.msra.gmra.mxu0 %v777_v50  ;;  %v4075_v50 = vld [vmem:[%s4394_s27 + $0x4d8] sm:$0xff]  }
  0x9e   : > { %2673 = vmatmul.mubr.bf16.vlgmr.msra.gmra.mxu1 %v784_v55  ;;  %3648 = vmatpush3.bf16.msra.mxu0 %v4027_v60  ;;  %v4080_v55 = vld [vmem:[%s4394_s27 + $0x410] sm:$0xff]   ;;  %v4085_v60 = vld [vmem:[%s4394_s27 + $0x488] sm:$0xff]  }
  0x9f   : > { %3670 = vmatpush3.bf16.msra.mxu1 %v4028_v61  ;;  %3649 = vmatprep.subr.bf16.mxu0 %v4029_v62  ;;  %v4086_v61 = vld [vmem:[%s4394_s27 + $0x440] sm:$0xff]  }
  0xa0   : > { %3671 = vmatprep.subr.bf16.mxu1 %v4030_v63  ;;  %2712 = vmatprep.mubr.bf16.mxu0 %v802_v29  ;;  %v212_v62 = vld [vmem:[%s4404_s4 + $0x20] sm:$0xff]  ;;  %v4113_v29 = vld [vmem:[%s4394_s27 + $0x510] sm:$0xff]  }
  0xa1   : > { %2752 = vmatprep.mubr.bf16.mxu1 %v803_v32  ;;  %v4087_v63 = vld [vmem:[%s4394_s27 + $0x4c0] sm:$0xff]   ;;  %v4116_v32 = vld [vmem:[%s4394_s27 + $0x5c8] sm:$0xff]  }
  0xa2   : > { %3650 = vmatpush3.bf16.msra.mxu0 %v4031_v0  ;;  %v811_v0 = vrot.slane %v212_v62, %v4442_v42 }
  0xa3   : > { %3672 = vmatpush3.bf16.msra.mxu1 %v4032_v1  ;;  %3651 = vmatprep.subr.bf16.mxu0 %v4033_v2  ;;  %v804_v1 = vcombine.high %v212_v62, %v212_v62  ;;  %v4088_v2 = vld [vmem:[%s4394_s27 + $0x400] sm:$0xff]   ;;  %v4140_v62 = vld [vmem:[%s4394_s27 + $0x658] sm:$0xff]  }
  0xa4   : > { %3673 = vmatprep.subr.bf16.mxu1 %v4034_v3  ;;  %v4089_v3 = vld [vmem:[%s4394_s27 + $0x480] sm:$0xff]  }
  0xa6   : > { %3652 = vmatpush3.bf16.msra.mxu0 %v4035_v4  ;;  %v819_v4 = vcombine.high %v811_v0, %v811_v0 }
  0xa7   : > { %3674 = vmatpush3.bf16.msra.mxu1 %v4036_v5  ;;  %3653 = vmatprep.subr.bf16.mxu0 %v4037_v6  ;;  %v818_v5 = vrot.slane %v804_v1, %v4442_v42  ;;  %v4091_v6 = vld [vmem:[%s4394_s27 + $0x578] sm:$0xff]  }
  0xa8   : > { %3675 = vmatprep.subr.bf16.mxu1 %v4038_v7  ;;  %v4143_v1 = vld [vmem:[%s4394_s27 + $0x698] sm:$0xff]  }
  0xa9   : > { %v820_v7 = vcombine.high %v818_v5, %v818_v5 }
  0xaa   : > { %3654 = vmatpush3.bf16.msra.mxu0 %v4039_v8  ;;  %v4092_v8 = vld [vmem:[%s4394_s27 + $0x5f8] sm:$0xff]  }
  0xab   : > { %3676 = vmatpush3.bf16.msra.mxu1 %v4040_v9  ;;  %3655 = vmatprep.subr.bf16.mxu0 %v4041_v10  ;;  %v4093_v9 = vld [vmem:[%s4394_s27 + $0x538] sm:$0xff]  }
  0xac   : > { %3677 = vmatprep.subr.bf16.mxu1 %v4042_v11  ;;  %v4094_v10 = vld [vmem:[%s4394_s27 + $0x5b8] sm:$0xff]   ;;  %v4095_v11 = vld [vmem:[%s4394_s27 + $0x570] sm:$0xff]  }
  0xae   : > { %3656 = vmatpush3.bf16.msra.mxu0 %v4043_v12  ;;  %v4096_v12 = vld [vmem:[%s4394_s27 + $0x5f0] sm:$0xff]  }
  0xaf   : > { %3678 = vmatpush3.bf16.msra.mxu1 %v4044_v13  ;;  %3657 = vmatprep.subr.bf16.mxu0 %v4045_v14  ;;  %v4097_v13 = vld [vmem:[%s4394_s27 + $0x530] sm:$0xff]  }
  0xb0   : > { %3679 = vmatprep.subr.bf16.mxu1 %v4046_v15  ;;  %v4098_v14 = vld [vmem:[%s4394_s27 + $0x5b0] sm:$0xff]   ;;  %v4099_v15 = vld [vmem:[%s4394_s27 + $0x568] sm:$0xff]  }
  0xb2   : > { %3658 = vmatpush3.bf16.msra.mxu0 %v4047_v16  ;;  %v4100_v16 = vld [vmem:[%s4394_s27 + $0x5e8] sm:$0xff]  }
  0xb3   : > { %3680 = vmatpush3.bf16.msra.mxu1 %v4048_v17  ;;  %3659 = vmatprep.subr.bf16.mxu0 %v4049_v18  ;;  %v4101_v17 = vld [vmem:[%s4394_s27 + $0x528] sm:$0xff]  }
  0xb4   : > { %3681 = vmatprep.subr.bf16.mxu1 %v4050_v19  ;;  %v4102_v18 = vld [vmem:[%s4394_s27 + $0x5a8] sm:$0xff]   ;;  %v4103_v19 = vld [vmem:[%s4394_s27 + $0x560] sm:$0xff]  }
  0xb6   : > { %3660 = vmatpush3.bf16.msra.mxu0 %v4051_v20  ;;  %v4104_v20 = vld [vmem:[%s4394_s27 + $0x5e0] sm:$0xff]  }
  0xb7   : > { %3682 = vmatpush3.bf16.msra.mxu1 %v4052_v21  ;;  %3661 = vmatprep.subr.bf16.mxu0 %v4053_v22  ;;  %v4105_v21 = vld [vmem:[%s4394_s27 + $0x520] sm:$0xff]  }
  0xb8   : > { %3683 = vmatprep.subr.bf16.mxu1 %v4054_v24  ;;  %v4106_v22 = vld [vmem:[%s4394_s27 + $0x5a0] sm:$0xff]   ;;  %v4108_v24 = vld [vmem:[%s4394_s27 + $0x5d8] sm:$0xff]  }
  0xba   : > { %3662 = vmatpush3.bf16.msra.mxu0 %v4055_v27  ;;  %v4111_v27 = vld [vmem:[%s4394_s27 + $0x550] sm:$0xff]  }
  0xbb   : > { %3684 = vmatpush3.bf16.msra.mxu1 %v4056_v28  ;;  %3691 = vmatprep.subr.bf16.mxu0 %v4058_v31  ;;  %v4112_v28 = vld [vmem:[%s4394_s27 + $0x5d0] sm:$0xff]   ;;  %v4115_v31 = vld [vmem:[%s4394_s27 + $0x548] sm:$0xff]  }
  0xbc   : > { %3713 = vmatprep.subr.bf16.mxu1 %v4059_v33  ;;  %v4117_v33 = vld [vmem:[%s4394_s27 + $0x508] sm:$0xff]  }
  0xbd   : > { %2713 = vmatmul.mubr.bf16.vlgmr.msra.gmra.mxu0 %v794_v25  ;;  %v4109_v25 = vld [vmem:[%s4394_s27 + $0x518] sm:$0xff]  }
  0xbe   : > { %2753 = vmatmul.mubr.bf16.vlgmr.msra.gmra.mxu1 %v801_v30  ;;  %3692 = vmatpush3.bf16.msra.mxu0 %v4060_v34  ;;  %v4114_v30 = vld [vmem:[%s4394_s27 + $0x590] sm:$0xff]   ;;  %v4118_v34 = vld [vmem:[%s4394_s27 + $0x588] sm:$0xff]  }
  0xbf   : > { %3714 = vmatpush3.bf16.msra.mxu1 %v4061_v35  ;;  %3693 = vmatprep.subr.bf16.mxu0 %v4062_v36  ;;  %v4119_v35 = vld [vmem:[%s4394_s27 + $0x540] sm:$0xff]  }
  0xc0   : > { %3715 = vmatprep.subr.bf16.mxu1 %v4063_v37  ;;  %2792 = vmatprep.mubr.bf16.mxu0 %v819_v4  ;;  %v213_v36 = vld [vmem:[%s4404_s4 + $0x28] sm:$0xff]  ;;  %v4146_v4 = vld [vmem:[%s4394_s27 + $0x610] sm:$0xff]  }
  0xc1   : > { %2832 = vmatprep.mubr.bf16.mxu1 %v820_v7  ;;  %v4120_v37 = vld [vmem:[%s4394_s27 + $0x5c0] sm:$0xff]   ;;  %v4149_v7 = vld [vmem:[%s4394_s27 + $0x6c8] sm:$0xff]  }
  0xc2   : > { %3694 = vmatpush3.bf16.msra.mxu0 %v4064_v38  ;;  %v828_v38 = vrot.slane %v213_v36, %v4442_v42 }
  0xc3   : > { %3716 = vmatpush3.bf16.msra.mxu1 %v4065_v39  ;;  %3695 = vmatprep.subr.bf16.mxu0 %v4066_v40  ;;  %v821_v39 = vcombine.high %v213_v36, %v213_v36  ;;  %v4121_v40 = vld [vmem:[%s4394_s27 + $0x500] sm:$0xff]   ;;  %v4167_v36 = vld [vmem:[%s4394_s27 + $0x728] sm:$0xff]  }
  0xc4   : > { %3717 = vmatprep.subr.bf16.mxu1 %v4067_v41  ;;  %v4122_v41 = vld [vmem:[%s4394_s27 + $0x580] sm:$0xff]  }
  0xc6   : > { %3696 = vmatpush3.bf16.msra.mxu0 %v4068_v43  ;;  %v836_v43 = vcombine.high %v828_v38, %v828_v38 }
  0xc7   : > { %3718 = vmatpush3.bf16.msra.mxu1 %v4069_v44  ;;  %3697 = vmatprep.subr.bf16.mxu0 %v4070_v45  ;;  %v835_v44 = vrot.slane %v821_v39, %v4442_v42  ;;  %v4124_v45 = vld [vmem:[%s4394_s27 + $0x678] sm:$0xff]   ;;  %v4168_v39 = vld [vmem:[%s4394_s27 + $0x7a8] sm:$0xff]  }
  0xc8   : > { %3719 = vmatprep.subr.bf16.mxu1 %v4071_v46 }
  0xc9   : > { %v837_v46 = vcombine.high %v835_v44, %v835_v44 }
  0xca   : > { %3698 = vmatpush3.bf16.msra.mxu0 %v4072_v47  ;;  %v4125_v47 = vld [vmem:[%s4394_s27 + $0x6f8] sm:$0xff]  }
  0xcb   : > { %3720 = vmatpush3.bf16.msra.mxu1 %v4073_v48  ;;  %3699 = vmatprep.subr.bf16.mxu0 %v4074_v49  ;;  %v4126_v48 = vld [vmem:[%s4394_s27 + $0x638] sm:$0xff]  }
  0xcc   : > { %3721 = vmatprep.subr.bf16.mxu1 %v4075_v50  ;;  %v4127_v49 = vld [vmem:[%s4394_s27 + $0x6b8] sm:$0xff]   ;;  %v4128_v50 = vld [vmem:[%s4394_s27 + $0x670] sm:$0xff]  }
  0xce   : > { %3700 = vmatpush3.bf16.msra.mxu0 %v4076_v51  ;;  %v4129_v51 = vld [vmem:[%s4394_s27 + $0x6f0] sm:$0xff]  }
  0xcf   : > { %3722 = vmatpush3.bf16.msra.mxu1 %v4077_v52  ;;  %3701 = vmatprep.subr.bf16.mxu0 %v4078_v53  ;;  %v4130_v52 = vld [vmem:[%s4394_s27 + $0x630] sm:$0xff]  }
  0xd0   : > { %3723 = vmatprep.subr.bf16.mxu1 %v4079_v54  ;;  %v4131_v53 = vld [vmem:[%s4394_s27 + $0x6b0] sm:$0xff]   ;;  %v4132_v54 = vld [vmem:[%s4394_s27 + $0x668] sm:$0xff]  }
  0xd2   : > { %3702 = vmatpush3.bf16.msra.mxu0 %v4080_v55  ;;  %v4133_v55 = vld [vmem:[%s4394_s27 + $0x6e8] sm:$0xff]  }
  0xd3   : > { %3724 = vmatpush3.bf16.msra.mxu1 %v4081_v56  ;;  %3703 = vmatprep.subr.bf16.mxu0 %v4082_v57  ;;  %v4134_v56 = vld [vmem:[%s4394_s27 + $0x628] sm:$0xff]  }
  0xd4   : > { %3725 = vmatprep.subr.bf16.mxu1 %v4083_v58  ;;  %v4135_v57 = vld [vmem:[%s4394_s27 + $0x6a8] sm:$0xff]   ;;  %v4136_v58 = vld [vmem:[%s4394_s27 + $0x660] sm:$0xff]  }
  0xd6   : > { %3704 = vmatpush3.bf16.msra.mxu0 %v4084_v59  ;;  %v4137_v59 = vld [vmem:[%s4394_s27 + $0x6e0] sm:$0xff]  }
  0xd7   : > { %3726 = vmatpush3.bf16.msra.mxu1 %v4085_v60  ;;  %3705 = vmatprep.subr.bf16.mxu0 %v4086_v61  ;;  %v4138_v60 = vld [vmem:[%s4394_s27 + $0x620] sm:$0xff]  }
  0xd8   : > { %3727 = vmatprep.subr.bf16.mxu1 %v4087_v63  ;;  %v4139_v61 = vld [vmem:[%s4394_s27 + $0x6a0] sm:$0xff]   ;;  %v4141_v63 = vld [vmem:[%s4394_s27 + $0x6d8] sm:$0xff]  }
  0xda   : > { %3706 = vmatpush3.bf16.msra.mxu0 %v4088_v2  ;;  %v4144_v2 = vld [vmem:[%s4394_s27 + $0x650] sm:$0xff]  }
  0xdb   : > { %3728 = vmatpush3.bf16.msra.mxu1 %v4089_v3  ;;  %3735 = vmatprep.subr.bf16.mxu0 %v4091_v6  ;;  %v4145_v3 = vld [vmem:[%s4394_s27 + $0x6d0] sm:$0xff]   ;;  %v4148_v6 = vld [vmem:[%s4394_s27 + $0x648] sm:$0xff]  }
  0xdc   : > { %3757 = vmatprep.subr.bf16.mxu1 %v4092_v8  ;;  %v4150_v8 = vld [vmem:[%s4394_s27 + $0x608] sm:$0xff]  }
  0xdd   : > { %2793 = vmatmul.mubr.bf16.vlgmr.msra.gmra.mxu0 %v811_v0  ;;  %v4142_v0 = vld [vmem:[%s4394_s27 + $0x618] sm:$0xff]  }
  0xde   : > { %2833 = vmatmul.mubr.bf16.vlgmr.msra.gmra.mxu1 %v818_v5  ;;  %3736 = vmatpush3.bf16.msra.mxu0 %v4093_v9  ;;  %v4147_v5 = vld [vmem:[%s4394_s27 + $0x690] sm:$0xff]   ;;  %v4151_v9 = vld [vmem:[%s4394_s27 + $0x688] sm:$0xff]  }
  0xdf   : > { %3758 = vmatpush3.bf16.msra.mxu1 %v4094_v10  ;;  %3737 = vmatprep.subr.bf16.mxu0 %v4095_v11  ;;  %v4152_v10 = vld [vmem:[%s4394_s27 + $0x640] sm:$0xff]  }
  0xe0   : > { %3759 = vmatprep.subr.bf16.mxu1 %v4096_v12  ;;  %2872 = vmatprep.mubr.bf16.mxu0 %v836_v43  ;;  %v4153_v11 = vld [vmem:[%s4394_s27 + $0x6c0] sm:$0xff]   ;;  %v214_v12 = vld [vmem:[%s4404_s4 + $0x30] sm:$0xff] }
  0xe1   : > { %2912 = vmatprep.mubr.bf16.mxu1 %v837_v46  ;;  %v4171_v46 = vld [vmem:[%s4394_s27 + $0x720] sm:$0xff]  }
  0xe2   : > { %3738 = vmatpush3.bf16.msra.mxu0 %v4097_v13  ;;  %v4154_v13 = vld [vmem:[%s4394_s27 + $0x600] sm:$0xff]  }
  0xe3   : > { %3760 = vmatpush3.bf16.msra.mxu1 %v4098_v14  ;;  %3739 = vmatprep.subr.bf16.mxu0 %v4099_v15  ;;  %v845_v14 = vrot.slane %v214_v12, %v4442_v42  ;;  %v838_v15 = vcombine.high %v214_v12, %v214_v12 }
  0xe4   : > { %3761 = vmatprep.subr.bf16.mxu1 %v4100_v16  ;;  %v4155_v16 = vld [vmem:[%s4394_s27 + $0x680] sm:$0xff]  }
  0xe6   : > { %3740 = vmatpush3.bf16.msra.mxu0 %v4101_v17  ;;  %v853_v17 = vcombine.high %v845_v14, %v845_v14 }
  0xe7   : > { %3762 = vmatpush3.bf16.msra.mxu1 %v4102_v18  ;;  %3741 = vmatprep.subr.bf16.mxu0 %v4103_v19  ;;  %v852_v18 = vrot.slane %v838_v15, %v4442_v42  ;;  %v4157_v19 = vld [vmem:[%s4394_s27 + $0x778] sm:$0xff]  }
  0xe8   : > { %3763 = vmatprep.subr.bf16.mxu1 %v4104_v20  ;;  %v4158_v20 = vld [vmem:[%s4394_s27 + $0x7f8] sm:$0xff]  }
  0xea   : > { %3742 = vmatpush3.bf16.msra.mxu0 %v4105_v21  ;;  %v854_v21 = vcombine.high %v852_v18, %v852_v18 }
  0xeb   : > { %3764 = vmatpush3.bf16.msra.mxu1 %v4106_v22  ;;  %3743 = vmatprep.subr.bf16.mxu0 %v4107_v23  ;;  %v4159_v22 = vld [vmem:[%s4394_s27 + $0x738] sm:$0xff]  }
  0xec   : > { %3765 = vmatprep.subr.bf16.mxu1 %v4108_v24  ;;  %v4160_v23 = vld [vmem:[%s4394_s27 + $0x7b8] sm:$0xff]   ;;  %v4161_v24 = vld [vmem:[%s4394_s27 + $0x770] sm:$0xff]  }
  0xee   : > { %3744 = vmatpush3.bf16.msra.mxu0 %v4109_v25  ;;  %v4162_v25 = vld [vmem:[%s4394_s27 + $0x7f0] sm:$0xff]  }
  0xef   : > { %3766 = vmatpush3.bf16.msra.mxu1 %v4110_v26  ;;  %3745 = vmatprep.subr.bf16.mxu0 %v4111_v27  ;;  %v4163_v26 = vld [vmem:[%s4394_s27 + $0x730] sm:$0xff]  }
  0xf0   : > { %3767 = vmatprep.subr.bf16.mxu1 %v4112_v28 }
  0xf2   : > { %3746 = vmatpush3.bf16.msra.mxu0 %v4113_v29  ;;  %v4164_v29 = vld [vmem:[%s4394_s27 + $0x7b0] sm:$0xff]  }
  0xf3   : > { %3768 = vmatpush3.bf16.msra.mxu1 %v4114_v30  ;;  %3747 = vmatprep.subr.bf16.mxu0 %v4115_v31  ;;  %v4165_v30 = vld [vmem:[%s4394_s27 + $0x768] sm:$0xff]  }
  0xf4   : > { %3769 = vmatprep.subr.bf16.mxu1 %v4116_v32 }
  0xf6   : > { %3748 = vmatpush3.bf16.msra.mxu0 %v4117_v33  ;;  %v4166_v33 = vld [vmem:[%s4394_s27 + $0x7e8] sm:$0xff]  }
  0xf7   : > { %3770 = vmatpush3.bf16.msra.mxu1 %v4118_v34  ;;  %3749 = vmatprep.subr.bf16.mxu0 %v4119_v35 }
  0xf8   : > { %3771 = vmatprep.subr.bf16.mxu1 %v4120_v37 }
  0xfa   : > { %3750 = vmatpush3.bf16.msra.mxu0 %v4121_v40 }
  0xfb   : > { %3772 = vmatpush3.bf16.msra.mxu1 %v4122_v41  ;;  %3779 = vmatprep.subr.bf16.mxu0 %v4124_v45  ;;  %v4169_v41 = vld [vmem:[%s4394_s27 + $0x760] sm:$0xff]  }
  0xfc   : > { %3801 = vmatprep.subr.bf16.mxu1 %v4125_v47  ;;  %v4170_v45 = vld [vmem:[%s4394_s27 + $0x7e0] sm:$0xff]  }
  0xfd   : > { %2873 = vmatmul.mubr.bf16.vlgmr.msra.gmra.mxu0 %v828_v38  ;;  %v4172_v47 = vld [vmem:[%s4394_s27 + $0x7a0] sm:$0xff]  }
  0xfe   : > { %2913 = vmatmul.mubr.bf16.vlgmr.msra.gmra.mxu1 %v835_v44  ;;  %3780 = vmatpush3.bf16.msra.mxu0 %v4126_v48  ;;  %v4173_v48 = vld [vmem:[%s4394_s27 + $0x758] sm:$0xff]  }
  0xff   : > { %3802 = vmatpush3.bf16.msra.mxu1 %v4127_v49  ;;  %3781 = vmatprep.subr.bf16.mxu0 %v4128_v50  ;;  %v4174_v49 = vld [vmem:[%s4394_s27 + $0x7d8] sm:$0xff]  }
 0x100   : > { %3803 = vmatprep.subr.bf16.mxu1 %v4129_v51  ;;  %2952 = vmatprep.mubr.bf16.mxu0 %v853_v17  ;;  %v4175_v50 = vld [vmem:[%s4394_s27 + $0x718] sm:$0xff]  }
 0x101   : > { %2992 = vmatprep.mubr.bf16.mxu1 %v854_v21  ;;  %v4176_v51 = vld [vmem:[%s4394_s27 + $0x798] sm:$0xff]  }
 0x102   : > { %3782 = vmatpush3.bf16.msra.mxu0 %v4130_v52  ;;  %v4177_v52 = vld [vmem:[%s4394_s27 + $0x750] sm:$0xff]  }
 0x103   : > { %3804 = vmatpush3.bf16.msra.mxu1 %v4131_v53  ;;  %3783 = vmatprep.subr.bf16.mxu0 %v4132_v54  ;;  %v4178_v53 = vld [vmem:[%s4394_s27 + $0x7d0] sm:$0xff]  }
 0x104   : > { %3805 = vmatprep.subr.bf16.mxu1 %v4133_v55  ;;  %v4179_v54 = vld [vmem:[%s4394_s27 + $0x710] sm:$0xff]  }
 0x105   : > { %v4180_v55 = vld [vmem:[%s4394_s27 + $0x790] sm:$0xff]  }
 0x106   : > { %3784 = vmatpush3.bf16.msra.mxu0 %v4134_v56  ;;  %v4181_v56 = vld [vmem:[%s4394_s27 + $0x748] sm:$0xff]  }
 0x107   : > { %3806 = vmatpush3.bf16.msra.mxu1 %v4135_v57  ;;  %3785 = vmatprep.subr.bf16.mxu0 %v4136_v58  ;;  %v4182_v57 = vld [vmem:[%s4394_s27 + $0x7c8] sm:$0xff]  }
 0x108   : > { %3807 = vmatprep.subr.bf16.mxu1 %v4137_v59  ;;  %v4183_v58 = vld [vmem:[%s4394_s27 + $0x708] sm:$0xff]  }
 0x109   : > { %v4184_v59 = vld [vmem:[%s4394_s27 + $0x788] sm:$0xff]  }
 0x10a   : > { %3786 = vmatpush3.bf16.msra.mxu0 %v4138_v60  ;;  %v4185_v60 = vld [vmem:[%s4394_s27 + $0x740] sm:$0xff]  }
 0x10b   : > { %3808 = vmatpush3.bf16.msra.mxu1 %v4139_v61  ;;  %3787 = vmatprep.subr.bf16.mxu0 %v4140_v62  ;;  %v4186_v61 = vld [vmem:[%s4394_s27 + $0x7c0] sm:$0xff]   ;;  %v215_v62 = vld [vmem:[%s4404_s4 + $0x38] sm:$0xff] }
 0x10c   : > { %3809 = vmatprep.subr.bf16.mxu1 %v4141_v63  ;;  %v862_v63 = vrot.slane %v215_v62, %v4442_v42 }
 0x10e   : > { %3788 = vmatpush3.bf16.msra.mxu0 %v4142_v0  ;;  %v855_v0 = vcombine.high %v215_v62, %v215_v62 }
 0x10f   : > { %3810 = vmatpush3.bf16.msra.mxu1 %v4143_v1  ;;  %3789 = vmatprep.subr.bf16.mxu0 %v4144_v2  ;;  %v4187_v1 = vld [vmem:[%s4394_s27 + $0x700] sm:$0xff]  }
 0x110   : > { %3811 = vmatprep.subr.bf16.mxu1 %v4145_v3  ;;  %v4188_v2 = vld [vmem:[%s4394_s27 + $0x780] sm:$0xff]   ;;  %v870_v3 = vcombine.high %v862_v63, %v862_v63 }
 0x112   : > { %3790 = vmatpush3.bf16.msra.mxu0 %v4146_v4  ;;  %v869_v4 = vrot.slane %v855_v0, %v4442_v42 }
 0x113   : > { %3812 = vmatpush3.bf16.msra.mxu1 %v4147_v5  ;;  %3791 = vmatprep.subr.bf16.mxu0 %v4148_v6 }
 0x114   : > { %3813 = vmatprep.subr.bf16.mxu1 %v4149_v7  ;;  %v871_v5 = vcombine.high %v869_v4, %v869_v4 }
 0x116   : > { %3792 = vmatpush3.bf16.msra.mxu0 %v4150_v8 }
 0x117   : > { %3814 = vmatpush3.bf16.msra.mxu1 %v4151_v9  ;;  %3793 = vmatprep.subr.bf16.mxu0 %v4152_v10 }
 0x118   : > { %3815 = vmatprep.subr.bf16.mxu1 %v4153_v11 }
 0x11a   : > { %3794 = vmatpush3.bf16.msra.mxu0 %v4154_v13 }
 0x11b   : > { %3816 = vmatpush3.bf16.msra.mxu1 %v4155_v16  ;;  %3823 = vmatprep.subr.bf16.mxu0 %v4157_v19 }
 0x11c   : > { %3845 = vmatprep.subr.bf16.mxu1 %v4158_v20 }
 0x11d   : > { %v3531_v27 = vpop.f32.mrf.mxu0  ;;  %2953 = vmatmul.mubr.bf16.vlgmr.msra.gmra.mxu0 %v845_v14 }
 0x11e   : > { %v3553_v28 = vpop.f32.mrf.mxu1  ;;  %2993 = vmatmul.mubr.bf16.vlgmr.msra.gmra.mxu1 %v852_v18  ;;  %3824 = vmatpush3.bf16.msra.mxu0 %v4159_v22 }
 0x11f   : > { %3846 = vmatpush3.bf16.msra.mxu1 %v4160_v23  ;;  %v3532_v31 = vpop.f32.mrf.mxu0  ;;  %3825 = vmatprep.subr.bf16.mxu0 %v4161_v24 }
 0x120   : > { %v3554_v32 = vpop.f32.mrf.mxu1  ;;  %3847 = vmatprep.subr.bf16.mxu1 %v4162_v25  ;;  %v3533_v34 = vadd.f32 %v3532_v31, %v3531_v27  ;;  %3032 = vmatprep.mubr.bf16.mxu0 %v870_v3 }
 0x121   : > { %v3555_v35 = vadd.f32 %v3554_v32, %v3553_v28  ;;  %v3534_v37 = vpop.f32.mrf.mxu0  ;;  %3072 = vmatprep.mubr.bf16.mxu1 %v871_v5 }
 0x122   : > { %v3556_v38 = vpop.f32.mrf.mxu1  ;;  %3826 = vmatpush3.bf16.msra.mxu0 %v4163_v26 }
 0x123   : > { %v4666_v40 = vadd.f32 %v3555_v35, %v3533_v34  ;;  %3848 = vmatpush3.bf16.msra.mxu1 %v4164_v29  ;;  %v3535_v43 = vpop.f32.mrf.mxu0  ;;  %3827 = vmatprep.subr.bf16.mxu0 %v4165_v30 }
 0x124   : > { %v3557_v44 = vpop.f32.mrf.mxu1  ;;  %3849 = vmatprep.subr.bf16.mxu1 %v4166_v33 }
 0x126   : > { %3828 = vmatpush3.bf16.msra.mxu0 %v4167_v36 }
 0x127   : > { %3850 = vmatpush3.bf16.msra.mxu1 %v4168_v39  ;;  %3829 = vmatprep.subr.bf16.mxu0 %v4169_v41 }
 0x128   : > { %3851 = vmatprep.subr.bf16.mxu1 %v4170_v45 }
 0x12a   : > { %3830 = vmatpush3.bf16.msra.mxu0 %v4171_v46 }
 0x12b   : > { %3852 = vmatpush3.bf16.msra.mxu1 %v4172_v47  ;;  %3831 = vmatprep.subr.bf16.mxu0 %v4173_v48 }
 0x12c   : > { %3853 = vmatprep.subr.bf16.mxu1 %v4174_v49 }
 0x12e   : > { %3832 = vmatpush3.bf16.msra.mxu0 %v4175_v50 }
 0x12f   : > { %3854 = vmatpush3.bf16.msra.mxu1 %v4176_v51  ;;  %3833 = vmatprep.subr.bf16.mxu0 %v4177_v52 }
 0x130   : > { %3855 = vmatprep.subr.bf16.mxu1 %v4178_v53 }
 0x132   : > { %3834 = vmatpush3.bf16.msra.mxu0 %v4179_v54 }
 0x133   : > { %3856 = vmatpush3.bf16.msra.mxu1 %v4180_v55  ;;  %3835 = vmatprep.subr.bf16.mxu0 %v4181_v56 }
 0x134   : > { %3857 = vmatprep.subr.bf16.mxu1 %v4182_v57 }
 0x136   : > { %3836 = vmatpush3.bf16.msra.mxu0 %v4183_v58 }
 0x137   : > { %3858 = vmatpush3.bf16.msra.mxu1 %v4184_v59  ;;  %3837 = vmatprep.subr.bf16.mxu0 %v4185_v60 }
 0x138   : > { %3859 = vmatprep.subr.bf16.mxu1 %v4186_v61 }
 0x13a   : > { %3838 = vmatpush3.bf16.msra.mxu0 %v4187_v1 }
 0x13b   : > { %3860 = vmatpush3.bf16.msra.mxu1 %v4188_v2 }
 0x13d   : > { %v3575_v6 = vpop.f32.mrf.mxu0  ;;  %3033 = vmatmul.mubr.bf16.vlgmr.msra.gmra.mxu0 %v862_v63 }
 0x13e   : > { %v3597_v7 = vpop.f32.mrf.mxu1  ;;  %3073 = vmatmul.mubr.bf16.vlgmr.msra.gmra.mxu1 %v869_v4 }
 0x13f   : > { %v3576_v8 = vpop.f32.mrf.mxu0 }
 0x140   : > { %v3598_v9 = vpop.f32.mrf.mxu1  ;;  %v3577_v10 = vadd.f32 %v3576_v8, %v3575_v6 }
 0x141   : > { %v3599_v11 = vadd.f32 %v3598_v9, %v3597_v7  ;;  %v3578_v12 = vpop.f32.mrf.mxu0 }
 0x142   : > { %v3600_v13 = vpop.f32.mrf.mxu1  ;;  %v2555_v14 = vadd.f32 %v3577_v10, %v4666_v40 }
 0x143   : > { %v3579_v42 = vpop.f32.mrf.mxu0 }
 0x144   : > { %v3601_v15 = vpop.f32.mrf.mxu1  ;;  %v2595_v16 = vadd.f32 %v3599_v11, %v2555_v14 }
 0x15d   : > { %v3619_v17 = vpop.f32.mrf.mxu0 }
 0x15e   : > { %v3641_v18 = vpop.f32.mrf.mxu1 }
 0x15f   : > { %v3620_v19 = vpop.f32.mrf.mxu0 }
 0x160   : > { %v3642_v20 = vpop.f32.mrf.mxu1  ;;  %v3621_v21 = vadd.f32 %v3620_v19, %v3619_v17 }
 0x161   : > { %v3643_v22 = vadd.f32 %v3642_v20, %v3641_v18  ;;  %v3622_v23 = vpop.f32.mrf.mxu0 }
 0x162   : > { %v3644_v24 = vpop.f32.mrf.mxu1  ;;  %v2635_v25 = vadd.f32 %v3621_v21, %v2595_v16 }
 0x163   : > { %v3623_v26 = vpop.f32.mrf.mxu0 }
 0x164   : > { %v3645_v27 = vpop.f32.mrf.mxu1  ;;  %v2675_v28 = vadd.f32 %v3643_v22, %v2635_v25  ;;  %v207_v22 = vld [vmem:[#allocation2] sm:$0xf] }
 0x17d   : > { %v3663_v29 = vpop.f32.mrf.mxu0 }
 0x17e   : > { %v3685_v30 = vpop.f32.mrf.mxu1 }
 0x17f   : > { %v3664_v31 = vpop.f32.mrf.mxu0 }
 0x180   : > { %v3686_v32 = vpop.f32.mrf.mxu1  ;;  %v3665_v33 = vadd.f32 %v3664_v31, %v3663_v29 }
 0x181   : > { %v3687_v34 = vadd.f32 %v3686_v32, %v3685_v30  ;;  %v3666_v35 = vpop.f32.mrf.mxu0 }
 0x182   : > { %v3688_v36 = vpop.f32.mrf.mxu1  ;;  %v2715_v37 = vadd.f32 %v3665_v33, %v2675_v28 }
 0x183   : > { %v3667_v38 = vpop.f32.mrf.mxu0 }
 0x184   : > { %v3689_v39 = vpop.f32.mrf.mxu1  ;;  %v2755_v40 = vadd.f32 %v3687_v34, %v2715_v37 }
 0x19d   : > { %v3707_v41 = vpop.f32.mrf.mxu0 }
 0x19e   : > { %v3729_v43 = vpop.f32.mrf.mxu1 }
 0x19f   : > { %v3708_v44 = vpop.f32.mrf.mxu0 }
 0x1a0   : > { %v3730_v45 = vpop.f32.mrf.mxu1  ;;  %v3709_v46 = vadd.f32 %v3708_v44, %v3707_v41 }
 0x1a1   : > { %v3731_v47 = vadd.f32 %v3730_v45, %v3729_v43  ;;  %v3710_v48 = vpop.f32.mrf.mxu0 }
 0x1a2   : > { %v3732_v49 = vpop.f32.mrf.mxu1  ;;  %v2795_v50 = vadd.f32 %v3709_v46, %v2755_v40 }
 0x1a3   : > { %v3711_v51 = vpop.f32.mrf.mxu0 }
 0x1a4   : > { %v3733_v52 = vpop.f32.mrf.mxu1  ;;  %v2835_v53 = vadd.f32 %v3731_v47, %v2795_v50 }
 0x1bd   : > { %v3751_v54 = vpop.f32.mrf.mxu0 }
 0x1be   : > { %v3773_v55 = vpop.f32.mrf.mxu1 }
 0x1bf   : > { %v3752_v56 = vpop.f32.mrf.mxu0 }
 0x1c0   : > { %v3774_v57 = vpop.f32.mrf.mxu1  ;;  %v3753_v6 = vadd.f32 %v3752_v56, %v3751_v54 }
 0x1c1   : > { %v3754_v58 = vpop.f32.mrf.mxu0  ;;  %v3775_v8 = vadd.f32 %v3774_v57, %v3773_v55 }
 0x1c2   : > { %v3776_v59 = vpop.f32.mrf.mxu1  ;;  %v2875_v7 = vadd.f32 %v3753_v6, %v2835_v53 }
 0x1c3   : > { %v3755_v60 = vpop.f32.mrf.mxu0 }
 0x1c4   : > { %v3777_v61 = vpop.f32.mrf.mxu1  ;;  %v2915_v10 = vadd.f32 %v3775_v8, %v2875_v7 }
 0x1dd   : > { %v3795_v62 = vpop.f32.mrf.mxu0 }
 0x1de   : > { %v3817_v63 = vpop.f32.mrf.mxu1 }
 0x1df   : > { %v3796_v0 = vpop.f32.mrf.mxu0 }
 0x1e0   : > { %v3818_v1 = vpop.f32.mrf.mxu1  ;;  %v3797_v9 = vadd.f32 %v3796_v0, %v3795_v62 }
 0x1e1   : > { %v3798_v2 = vpop.f32.mrf.mxu0  ;;  %v3819_v12 = vadd.f32 %v3818_v1, %v3817_v63 }
 0x1e2   : > { %v3820_v3 = vpop.f32.mrf.mxu1  ;;  %v2955_v11 = vadd.f32 %v3797_v9, %v2915_v10 }
 0x1e3   : > { %v3799_v4 = vpop.f32.mrf.mxu0 }
 0x1e4   : > { %v3821_v5 = vpop.f32.mrf.mxu1  ;;  %v2995_v16 = vadd.f32 %v3819_v12, %v2955_v11 }
 0x1fd   : > { %v3839_v13 = vpop.f32.mrf.mxu0 }
 0x1fe   : > { %v3861_v14 = vpop.f32.mrf.mxu1 }
 0x1ff   : > { %v3840_v42 = vpop.f32.mrf.mxu0 }
 0x200   : > { %v3862_v15 = vpop.f32.mrf.mxu1  ;;  %v3841_v17 = vadd.f32 %v3840_v42, %v3839_v13 }
 0x201   : > { %v3842_v18 = vpop.f32.mrf.mxu0  ;;  %v3863_v21 = vadd.f32 %v3862_v15, %v3861_v14 }
 0x202   : > { %v3864_v19 = vpop.f32.mrf.mxu1  ;;  %v3035_v20 = vadd.f32 %v3841_v17, %v2995_v16 }
 0x203   : > { %v3843_v23 = vpop.f32.mrf.mxu0 }
 0x204   : > { %v3865_v24 = vpop.f32.mrf.mxu1  ;;  %v3075_v25 = vadd.f32 %v3863_v21, %v3035_v20  ;;  %3085 = sbr.rel (%p3509_p1) target bundleno = 888 (0x378), region = 44 }
 0x206   : > { %v3080_v26 = vadd.f32 %v3075_v25, %v207_v22 }
 0x208   : > { %3081 = vst [vmem:[#allocation2] sm:$0xf] %v3080_v26 }
 0x209   : > { %vm3088_vm0 = vcmask 1043456   ;;  %v4289_v30 = vmov 0.0   ;;  %vm4290_vm1 = vmmov 0   ;;  %v3168_v35 = vstv %s3167_s22 }
 0x20a   : > { %3869 = vmatprep.subr.mxu0 %v4289_v30  ;;  %3871 = vmatprep.mubr.msk.f32.mxu0 %vm4290_vm1, %v4289_v30  ;;  %vm3171_vm2 = vcmask 9216  }
 0x20f   : > { %v3086_v27 = vld [vmem:[#allocation2] sm:$0xf] }
 0x210   : > { %v3087_v28 = vmul.f32 %v3086_v27, %v3086_v27 }
 0x212   : > { %v3089_v29 = vsel %vm3088_vm0, %v3087_v28, 0.0 }
 0x213   : > { %3090 = vadd.xlane.f32.xlu0 %v3089_v29 }
 0x29c   : > { %v3091_v31 = vpop.xlane.xlu0 %3090 }
 0x29d   : > { %4190 = vrsqrt.f32 %v3091_v31 }
 0x2aa   : > { %v4191_v32 = vpop.eup %4190 }
 0x2ab   : > { %v3093_v33 = vmul.f32 %v4191_v32, %v3086_v27 }
 0x2ad   : > { %v3095_v34 = vrot.slane %v3093_v33, 2 }
 0x2af   : > { %3870 = vmatpush3.xpose.msra.mxu0 %v3095_v34 }
 0x2b2   : > { %3872 = vmatmul.mubr.f32.vlgmr.msra.gmra.mxu0 %v3093_v33 }
 0x372   : > { %v3163_v36 = vpop.f32.mrf.mxu0 }
 0x373   : > { %v3169_v37 = vmul.f32 %v3168_v35, %v3163_v36 }
 0x374   : > { %v3873_v38 = vpop.f32.mrf.mxu0 }
 0x375   : > { %v3170_v39 = vsub.f32 1.0, %v3169_v37 }
 0x377   : > { %3172 = vst.msk [vmem:[#allocation7] sm:$0x3] %vm3171_vm2, %v3170_v39 }
 0x378 PF: > { %p3885_p2 = scmp.eq.s32.totalorder %s4334_s2, 2  ;;  %s4291_s5 = smov [#allocation7]  }
 0x379   : > { %s3180_s6 = sshll.u32 %s4291_s5, 4  ;;  %s3181_s6 = int_to_ptr.vmem [resolvable:$true] %s3180_s6 }
 0x37a   : > { %s4220_s7 = scalar_lea.vmem %s3181_s6, 32  ;;  %p4227_p6 = scmp.lt.s32.totalorder %s3181_s6, %s3181_s6 }
 0x37b   : > { %p4221_p3 = scmp.ne.s32.totalorder %s3181_s6, %s4220_s7  ;;  %p4228_p10 = scmp.lt.s32.totalorder %s4220_s7, %s4220_s7 }
 0x37d   : > { %p4222_p4 = pnand %p4221_p3, %p3885_p2  ;;  %p4229_p12 = por %p4228_p10, %p4227_p6 }
 0x37f   : > { %p4223_p5 = pneg %p4222_p4 }
 0x381   : > { %p4230_p11 = pnand %p4229_p12, %p4223_p5 }
 0x383   : > { %4233 = shalt.err (!%p4230_p11)
}
 0x384   : > { %3877 = dma.vmem_to_hbm [thread:$0]  (%p3885_p2), %s3181_s6, 32, %s4721_s3, [#allocation6]  }
 0x385   : > { %4265 = dma.done.wait (%p3885_p2), [#allocation6], 32  }
 0x386   : > { %4267 = vsyncadd (%p3885_p2), [#allocation6], 4294967264 }
 0x387 PF: > { %p15_p13 = scmp.ge.s32.totalorder %s4337_s18, 5   ;;  %s4727_s14 = smov %s4274_s15 }
 0x388   : > { %s4728_s15 = smov %s4278_s16  ;;  %s4729_s16 = smov %s4347_s21 }
 0x389   : > { %s4730_s17 = smov %s4337_s18  ;;  %17 = sbr.rel (!%p15_p13) target bundleno = 6 (0x6), region = 80 }
 0x38e   :  { %3193 = vsyncpa [#allocation5], 1 }
 0x38f   :  { %3195 = vsyncpa [#allocation5 + $0x1], 1 }
 0x390   :  { %3196 = vsyncpa [#allocation6], 1 }
 0x391   :  { %3198 = vsyncpa [#allocation6 + $0x1], 1 }

</bundles_post_ra>
